<compile_context>
chip_gen: v7x
topology: tpu7x:2x2x1
jax: 0.10.0
libtpu: 0.0.40
codegen_flags: <defaults>
</compile_context>

<pallas_src>
import jax
import jax.numpy as jnp
from jax.experimental import pallas as pl
from jax.experimental import pallas as _pl_unused  # noqa: F401
from jax.experimental.pallas import tpu as pltpu  # noqa: F401  (not needed at these sizes)

LANE = 128


def ctt_head_kernel(x_ref, w_ref, b_ref, o_ref):
    # x_ref: (B, C, HW)  last video frame, lane-dense spatial dim
    # w_ref: (C, NCP)    fused (backbone @ fc1000) weights, 1/HW folded in,
    #                    zero-padded to lane-dense NCP
    # b_ref: (1, NCP)    fused bias, zero-padded
    # o_ref: (B, NCP)
    x = x_ref[...]                                   # (B, C, HW)
    # GAP as a single lane-axis sum (1/HW folded into w_ref).
    pooled = x.sum(axis=-1)                          # (B, C)

    # Tiny contraction over C on the VPU: unrolled broadcast-FMA beats pushing
    # a (B x C) x (C x NCP) matmul through the MXU (push/drain latency).
    C = w_ref.shape[0]
    out = b_ref[...] + pooled[:, 0:1] * w_ref[0:1, :]            # (B, NCP)
    for c in range(1, C):
        out = out + pooled[:, c:c + 1] * w_ref[c:c + 1, :]

    o_ref[...] = out.astype(o_ref.dtype)                         # (B, NCP)


def prepare_params(w_backbone, b_backbone, w_fc1000, b_fc1000, hw):
    """One-time parameter prep: fold GAP scale + fuse the two linear layers,
    then pad classes to a lane-dense width."""
    C, F1 = w_backbone.shape
    NC = w_fc1000.shape[1]
    NCP = max(((NC + LANE - 1) // LANE) * LANE, LANE)

    w_b = w_backbone.astype(jnp.float32)
    b_b = b_backbone.astype(jnp.float32)
    w_f = w_fc1000.astype(jnp.float32)
    b_f = b_fc1000.astype(jnp.float32)

    # Exact fold (both layers are linear, no activation in between).
    w_eff_real = (w_b * (1.0 / hw)) @ w_f                        # (C, NC)
    b_eff_real = b_b @ w_f + b_f                                 # (NC,)

    w_eff = jnp.zeros((C, NCP), jnp.float32).at[:, :NC].set(w_eff_real)
    b_eff = jnp.zeros((1, NCP), jnp.float32).at[:, :NC].set(
        b_eff_real.reshape(1, NC))
    return w_eff, b_eff, NC


def ctt_forward(x_enc, params):
    """x_enc: [B, T, C, H, W] float32 -> [B, num_classes] float32."""
    w_eff, b_eff, NC = params
    B, T, C, H, W = x_enc.shape
    HW = H * W
    NCP = w_eff.shape[1]

    # Contiguous reshape (free) -> lane-dense spatial dim for the DMA/reduce.
    x_flat = x_enc.reshape(B, T, C, HW)

    cost = pl.CostEstimate(
        flops=B * C * HW + 2 * B * C * NCP,
        transcendentals=0,
        bytes_accessed=4 * (B * C * HW + C * NCP + NCP + B * NCP),
    )

    grid_spec = pl.GridSpec(
        grid=(1,),
        in_specs=[
            # Last-frame selection fused into the index_map; T dim squeezed.
            pl.BlockSpec((B, None, C, HW), lambda i: (0, T - 1, 0, 0)),
            pl.BlockSpec((C, NCP), lambda i: (0, 0)),
            pl.BlockSpec((1, NCP), lambda i: (0, 0)),
        ],
        out_specs=pl.BlockSpec((B, NCP), lambda i: (0, 0)),
    )

    out_padded = pl.pallas_call(
        ctt_head_kernel,
        out_shape=jax.ShapeDtypeStruct((B, NCP), jnp.float32),
        grid_spec=grid_spec,
        cost_estimate=cost,
    )(x_flat, w_eff, b_eff)

    return out_padded[:, :NC]


def reference_forward(x_enc, w_backbone, b_backbone, w_fc1000, b_fc1000):
    B, T, C, H, W = x_enc.shape
    x_last = x_enc[:, -1].reshape(B, C, H * W)
    pooled = jnp.mean(x_last, axis=-1)
    feat = pooled @ w_backbone + b_backbone
    return feat @ w_fc1000 + b_fc1000


if __name__ == "__main__":
    key = jax.random.PRNGKey(0)
    k_x, k_w1, k_b1, k_w2, k_b2 = jax.random.split(key, 5)

    # small shapes consistent with the module's forward
    B, T, C, H, W = 2, 4, 3, 16, 16
    F1 = 1000            # cnn_feature50 'linear' output dim (ImageNet head)
    NC = 1               # num_classes default

    x_enc = jax.random.normal(k_x, (B, T, C, H, W), dtype=jnp.float32)

    # deterministic synthetic parameters
    w_backbone = 0.02 * jax.random.normal(k_w1, (C, F1), dtype=jnp.float32)
    b_backbone = 0.01 * jax.random.normal(k_b1, (F1,), dtype=jnp.float32)
    w_fc1000 = 0.02 * jax.random.normal(k_w2, (F1, NC), dtype=jnp.float32)
    b_fc1000 = 0.01 * jax.random.normal(k_b2, (NC,), dtype=jnp.float32)

    # one-time param prep (linear-linear fusion + GAP fold + lane padding),
    # like model init
    params = prepare_params(w_backbone, b_backbone, w_fc1000, b_fc1000, H * W)

    out = ctt_forward(x_enc, params)
    out = jax.block_until_ready(out)

    ref = reference_forward(x_enc, w_backbone, b_backbone, w_fc1000, b_fc1000)
    assert out.shape == (B, NC), out.shape
    assert jnp.allclose(out, ref, atol=1e-4, rtol=1e-4), (out, ref)

    print("KERNEL_OK")
</pallas_src>

<mosaic_0001>
module attributes {stable_mosaic.version = 11 : i64} {
  func.func @ctt_head_kernel(%arg0: i32, %arg1: memref<2x1x3x256xf32, #tpu.memory_space<vmem>>, %arg2: memref<3x128xf32, #tpu.memory_space<vmem>>, %arg3: memref<1x128xf32, #tpu.memory_space<vmem>>, %arg4: memref<2x128xf32, #tpu.memory_space<vmem>>) attributes {dimension_semantics = [#tpu.dimension_semantics<arbitrary>], iteration_bounds = array<i64: 1>, scalar_prefetch = 0 : i64, scratch_operands = 0 : i64, tpu.core_type = #tpu.core_type<tc>, window_params = [{transform_indices = @transform_0, window_bounds = array<i64: 2, 1, 3, 256>}, {pipeline_mode = #tpu.pipeline_mode<synchronous>, transform_indices = @transform_1, window_bounds = array<i64: 3, 128>}, {pipeline_mode = #tpu.pipeline_mode<synchronous>, transform_indices = @transform_2, window_bounds = array<i64: 1, 128>}, {pipeline_mode = #tpu.pipeline_mode<synchronous>, transform_indices = @transform_3, window_bounds = array<i64: 2, 128>}]} {
    %c0 = arith.constant 0 : index
    %c0_0 = arith.constant 0 : index
    %c0_1 = arith.constant 0 : index
    %c0_2 = arith.constant 0 : index
    %0 = vector.load %arg1[%c0, %c0_0, %c0_1, %c0_2] : memref<2x1x3x256xf32, #tpu.memory_space<vmem>>, vector<2x1x3x256xf32>
    %1 = vector.shape_cast %0 : vector<2x1x3x256xf32> to vector<2x3x256xf32>
    %cst = arith.constant dense<0.000000e+00> : vector<2x3xf32>
    %2 = vector.multi_reduction <add>, %1, %cst [2] : vector<2x3x256xf32> to vector<2x3xf32>
    %c0_3 = arith.constant 0 : index
    %c0_4 = arith.constant 0 : index
    %3 = vector.load %arg3[%c0_3, %c0_4] : memref<1x128xf32, #tpu.memory_space<vmem>>, vector<1x128xf32>
    %4 = vector.extract_strided_slice %2 {offsets = [0, 0], sizes = [2, 1], strides = [1, 1]} : vector<2x3xf32> to vector<2x1xf32>
    %c0_5 = arith.constant 0 : index
    %c0_6 = arith.constant 0 : index
    %5 = vector.load %arg2[%c0_5, %c0_6] : memref<3x128xf32, #tpu.memory_space<vmem>>, vector<1x128xf32>
    %6 = vector.broadcast %4 : vector<2x1xf32> to vector<2x128xf32>
    %7 = vector.broadcast %5 : vector<1x128xf32> to vector<2x128xf32>
    %8 = arith.mulf %6, %7 : vector<2x128xf32>
    %9 = vector.broadcast %3 : vector<1x128xf32> to vector<2x128xf32>
    %10 = arith.addf %9, %8 : vector<2x128xf32>
    %11 = vector.extract_strided_slice %2 {offsets = [0, 1], sizes = [2, 1], strides = [1, 1]} : vector<2x3xf32> to vector<2x1xf32>
    %c1 = arith.constant 1 : index
    %c0_7 = arith.constant 0 : index
    %12 = vector.load %arg2[%c1, %c0_7] : memref<3x128xf32, #tpu.memory_space<vmem>>, vector<1x128xf32>
    %13 = vector.broadcast %11 : vector<2x1xf32> to vector<2x128xf32>
    %14 = vector.broadcast %12 : vector<1x128xf32> to vector<2x128xf32>
    %15 = arith.mulf %13, %14 : vector<2x128xf32>
    %16 = arith.addf %10, %15 : vector<2x128xf32>
    %17 = vector.extract_strided_slice %2 {offsets = [0, 2], sizes = [2, 1], strides = [1, 1]} : vector<2x3xf32> to vector<2x1xf32>
    %c2 = arith.constant 2 : index
    %c0_8 = arith.constant 0 : index
    %18 = vector.load %arg2[%c2, %c0_8] : memref<3x128xf32, #tpu.memory_space<vmem>>, vector<1x128xf32>
    %19 = vector.broadcast %17 : vector<2x1xf32> to vector<2x128xf32>
    %20 = vector.broadcast %18 : vector<1x128xf32> to vector<2x128xf32>
    %21 = arith.mulf %19, %20 : vector<2x128xf32>
    %22 = arith.addf %16, %21 : vector<2x128xf32>
    %c0_9 = arith.constant 0 : index
    %c0_10 = arith.constant 0 : index
    %23 = vector.load %arg4[%c0_9, %c0_10] : memref<2x128xf32, #tpu.memory_space<vmem>>, vector<2x128xf32>
    tpu.vector_store %arg4[%c0_9, %c0_10], %22 {strides = array<i32>} : memref<2x128xf32, #tpu.memory_space<vmem>>, vector<2x128xf32>,
    return
  }
  func.func @transform_0(%arg0: i32) -> (i32, i32, i32, i32) {
    %c0_i32 = arith.constant 0 : i32
    %c3_i32 = arith.constant 3 : i32
    %c0_i32_0 = arith.constant 0 : i32
    %c0_i32_1 = arith.constant 0 : i32
    %c0_i32_2 = arith.constant 0 : i32
    return %c0_i32, %c3_i32, %c0_i32_0, %c0_i32_1 : i32, i32, i32, i32
  }
  func.func @transform_1(%arg0: i32) -> (i32, i32) {
    %c0_i32 = arith.constant 0 : i32
    %c0_i32_0 = arith.constant 0 : i32
    %c0_i32_1 = arith.constant 0 : i32
    return %c0_i32, %c0_i32_0 : i32, i32
  }
  func.func @transform_2(%arg0: i32) -> (i32, i32) {
    %c0_i32 = arith.constant 0 : i32
    %c0_i32_0 = arith.constant 0 : i32
    %c0_i32_1 = arith.constant 0 : i32
    return %c0_i32, %c0_i32_0 : i32, i32
  }
  func.func @transform_3(%arg0: i32) -> (i32, i32) {
    %c0_i32 = arith.constant 0 : i32
    %c0_i32_0 = arith.constant 0 : i32
    %c0_i32_1 = arith.constant 0 : i32
    return %c0_i32, %c0_i32_0 : i32, i32
  }
}

</mosaic_0001>

<bundles_post_ra>
// kernel: tpu_custom_call.1
= control target key start
LH: loop header
LB: loop body
LE: loop exit
PB: predicated region body
PF: predicated region fallthrough
CT: control target
= control target key end

     0   :  { %s1806_s0 = inlined_call_operand.vmem [shape: f32[2,4,3,256], index: 0, kind: input, shape index: {}]   ;;  %s1807_s1 = inlined_call_operand.vmem [shape: f32[3,128], index: 1, kind: input, shape index: {}]   ;;  %s1808_s2 = inlined_call_operand.vmem [shape: f32[1,128], index: 2, kind: input, shape index: {}]   ;;  %s1809_s3 = inlined_call_operand.hbm [shape: f32[2,128], index: 3, kind: output, shape index: {}]  }
   0x1   :  { %v1376_v0 = vld [vmem:[%s1807_s1] ss:$0 sm:$0xff]  ;;  %v1374_v1 = vld [vmem:[%s1806_s0 + $0x18] sm:$0xff] }
   0x2   :  { %v1375_v2 = vld [vmem:[%s1806_s0 + $0x38] sm:$0xff]  ;;  %89 = vbcast.lane.b32.xlu1 %v1376_v0, 256  ;;  %42 = vst [vmem:[#allocation2] sm:$0xff] %v1374_v1 }
   0x3   :  { %44 = vst [vmem:[#allocation2 + $0x8] sm:$0xff] %v1375_v2 }
   0x4   :  { %8 = vsyncpa [#allocation4], 0  ;;  %vm62_vm0 = vcmask 1042432   ;;  %v1410_v13 = vmov 0   ;;  %v1378_v14 = vld [vmem:[%s1807_s1 + $0x1] ss:$0 sm:$0xff]  ;;  %v75_v19 = vlaneseq }
   0x5   :  { %1383 = vset.pattern.permute.xlu0 %v1410_v13  ;;  %1382 = vset.pattern.permute.xlu1 %v1410_v13  ;;  %vm344_vm1 = vcmask 130112   ;;  %vm351_vm2 = vcmask 195712   ;;  %vm358_vm3 = vcmask 261312   ;;  %vm365_vm4 = vcmask 326912  }
   0x6   :  { %93 = vbcast.lane.b32.xlu1 %v1376_v0, 264  ;;  %v1449_v21 = vshrl.u32 %v75_v19, 7  ;;  %vm372_vm5 = vcmask 392512   ;;  %vm379_vm6 = vcmask 458112   ;;  %vm386_vm7 = vcmask 523712  }
   0x7   :  { %vm393_vm8 = vcmask 589312   ;;  %vm400_vm9 = vcmask 654912   ;;  %vm407_vm10 = vcmask 720512   ;;  %vm414_vm11 = vcmask 786112  }
   0x8   :  { %v77_v23 = vsub.s32 0, %v1449_v21  ;;  %vm421_vm12 = vcmask 851712   ;;  %vm428_vm13 = vcmask 917312   ;;  %vm435_vm14 = vcmask 982912  }
   0x9   :  { %v54_v3 = vld [vmem:[#allocation2] sm:$0x77]  ;;  %vm442_vm15 = vcmask 1048512  }
   0xa   :  { %v55_v4 = vld [vmem:[#allocation2 + $0x8] sm:$0x77]  ;;  %101 = vbcast.lane.b32.xlu1 %v1376_v0, 280  ;;  %v58_v5 = vcombine.high %v54_v3, %v54_v3  ;;  %v63_v6 = vsel %vm62_vm0, %v54_v3, 0.0 }
   0xb   :  { %v59_v7 = vcombine.high %v55_v4, %v55_v4  ;;  %v68_v9 = vsel %vm62_vm0, %v55_v4, 0.0  ;;  %v530_v4 = vsub.s32 1, %v1449_v21 }
   0xc   :  { %v64_v8 = vsel %vm62_vm0, %v58_v5, 0.0 }
   0xd   :  { %v69_v10 = vsel %vm62_vm0, %v59_v7, 0.0  ;;  %v65_v11 = vadd.f32 %v64_v8, %v63_v6  ;;  %vm523_vm0 = vcmask 1041409  }
   0xe   :  { %105 = vbcast.lane.b32.xlu1 %v1376_v0, 288  ;;  %v70_v12 = vadd.f32 %v69_v10, %v68_v9 }
   0xf   :  { %66 = vadd.xlane.f32.xlu0 %v65_v11 }
  0x12   :  { %109 = vbcast.lane.b32.xlu1 %v1376_v0, 296 }
  0x13   :  { %71 = vadd.xlane.f32.xlu0 %v70_v12 }
  0x16   :  { %113 = vbcast.lane.b32.xlu1 %v1376_v0, 304 }
  0x1a   :  { %117 = vbcast.lane.b32.xlu1 %v1376_v0, 312 }
  0x1e   :  { %121 = vbcast.lane.b32.xlu1 %v1376_v0, 320 }
  0x22   :  { %129 = vbcast.lane.b32.xlu1 %v1376_v0, 336 }
  0x26   :  { %137 = vbcast.lane.b32.xlu1 %v1376_v0, 352 }
  0x29   :  { %97 = vbcast.lane.b32.xlu0 %v1376_v0, 272 }
  0x2a   :  { %145 = vbcast.lane.b32.xlu1 %v1376_v0, 368 }
  0x2d   :  { %125 = vbcast.lane.b32.xlu0 %v1376_v0, 328 }
  0x2e   :  { %546 = vbcast.lane.b32.xlu1 %v1378_v14, 264 }
  0x31   :  { %133 = vbcast.lane.b32.xlu0 %v1376_v0, 344 }
  0x32   :  { %554 = vbcast.lane.b32.xlu1 %v1378_v14, 280 }
  0x35   :  { %141 = vbcast.lane.b32.xlu0 %v1376_v0, 360 }
  0x36   :  { %562 = vbcast.lane.b32.xlu1 %v1378_v14, 296 }
  0x39   :  { %149 = vbcast.lane.b32.xlu0 %v1376_v0, 376 }
  0x3a   :  { %570 = vbcast.lane.b32.xlu1 %v1378_v14, 312 }
  0x3d   :  { %542 = vbcast.lane.b32.xlu0 %v1378_v14, 256 }
  0x3e   :  { %578 = vbcast.lane.b32.xlu1 %v1378_v14, 328 }
  0x41   :  { %550 = vbcast.lane.b32.xlu0 %v1378_v14, 272 }
  0x42   :  { %586 = vbcast.lane.b32.xlu1 %v1378_v14, 344 }
  0x45   :  { %558 = vbcast.lane.b32.xlu0 %v1378_v14, 288 }
  0x46   :  { %594 = vbcast.lane.b32.xlu1 %v1378_v14, 360 }
  0x49   :  { %566 = vbcast.lane.b32.xlu0 %v1378_v14, 304 }
  0x4a   :  { %602 = vbcast.lane.b32.xlu1 %v1378_v14, 376 }
  0x4d   :  { %574 = vbcast.lane.b32.xlu0 %v1378_v14, 320 }
  0x51   :  { %582 = vbcast.lane.b32.xlu0 %v1378_v14, 336 }
  0x55   :  { %590 = vbcast.lane.b32.xlu0 %v1378_v14, 352 }
  0x59   :  { %598 = vbcast.lane.b32.xlu0 %v1378_v14, 368 }
  0x74   :  { %v90_v15 = vpop.permute.xlu1 %89 }
  0x78   :  { %v94_v16 = vpop.permute.xlu1 %93 }
  0x7c   :  { %v1444_v17 = vpop.permute.xlu1 %101 }
  0x80   :  { %v106_v18 = vpop.permute.xlu1 %105 }
  0x84   :  { %v1446_v20 = vpop.permute.xlu1 %109 }
  0x88   :  { %v114_v22 = vpop.permute.xlu1 %113 }
  0x8c   :  { %v1455_v26 = vpop.permute.xlu1 %117 }
  0x90   :  { %v122_v31 = vpop.permute.xlu1 %121 }
  0x94   :  { %v130_v36 = vpop.permute.xlu1 %129 }
  0x98   :  { %v138_v41 = vpop.permute.xlu1 %137 }
  0x9c   :  { %v1452_v24 = vpop.xlane.xlu0 %66  ;;  %v146_v46 = vpop.permute.xlu1 %145 }
  0x9d   :  { %v78_v25 = vrot.slane %v1452_v24, %v77_v23  ;;  %v531_v8 = vrot.slane %v1452_v24, %v530_v4 }
  0x9f   :  { %v168_v27 = vmul.f32 %v94_v16, %v78_v25  ;;  %v167_v28 = vmul.f32 %v90_v15, %v78_v25  ;;  %v171_v30 = vmul.f32 %v106_v18, %v78_v25  ;;  %v173_v34 = vmul.f32 %v114_v22, %v78_v25 }
  0xa0   :  { %v1457_v29 = vpop.xlane.xlu0 %71  ;;  %v170_v35 = vmul.f32 %v1444_v17, %v78_v25  ;;  %v175_v37 = vmul.f32 %v122_v31, %v78_v25  ;;  %v172_v39 = vmul.f32 %v1446_v20, %v78_v25  ;;  %v177_v40 = vmul.f32 %v130_v36, %v78_v25  ;;  %v1470_v3 = vpop.permute.xlu1 %546 }
  0xa1   :  { %241 = vperm.xlu0 %1383, %v168_v27   ;;  %238 = vperm.xlu1 %1382, %v167_v28   ;;  %v174_v42 = vmul.f32 %v1455_v26, %v78_v25  ;;  %v179_v44 = vmul.f32 %v138_v41, %v78_v25  ;;  %v82_v47 = vrot.slane %v1457_v29, %v77_v23 }
  0xa2   :  { %v181_v48 = vmul.f32 %v146_v46, %v78_v25 }
  0xa3   :  { %v183_v51 = vmul.f32 %v90_v15, %v82_v47  ;;  %v187_v56 = vmul.f32 %v106_v18, %v82_v47  ;;  %v184_v57 = vmul.f32 %v94_v16, %v82_v47  ;;  %v189_v58 = vmul.f32 %v114_v22, %v82_v47 }
  0xa4   :  { %v98_v32 = vpop.permute.xlu0 %97  ;;  %v186_v59 = vmul.f32 %v1444_v17, %v82_v47  ;;  %v191_v61 = vmul.f32 %v122_v31, %v82_v47  ;;  %v188_v62 = vmul.f32 %v1446_v20, %v82_v47  ;;  %v193_v63 = vmul.f32 %v130_v36, %v82_v47  ;;  %v555_v10 = vpop.permute.xlu1 %554 }
  0xa5   :  { %v169_v33 = vmul.f32 %v98_v32, %v78_v25  ;;  %250 = vperm.xlu0 %1383, %v171_v30   ;;  %v185_v54 = vmul.f32 %v98_v32, %v82_v47  ;;  %v190_v1 = vmul.f32 %v1455_v26, %v82_v47  ;;  %v195_v2 = vmul.f32 %v138_v41, %v82_v47 }
  0xa6   :  { %v197_v7 = vmul.f32 %v146_v46, %v82_v47  ;;  %v621_v20 = vmul.f32 %v1470_v3, %v531_v8  ;;  %v623_v26 = vmul.f32 %v555_v10, %v531_v8 }
  0xa7   :  { %244 = vperm.xlu1 %1382, %v169_v33  }
  0xa8   :  { %v126_v38 = vpop.permute.xlu0 %125  ;;  %v563_v15 = vpop.permute.xlu1 %562 }
  0xa9   :  { %256 = vperm.xlu0 %1383, %v173_v34   ;;  %v176_v45 = vmul.f32 %v126_v38, %v78_v25  ;;  %v192_v5 = vmul.f32 %v126_v38, %v82_v47  ;;  %v625_v30 = vmul.f32 %v563_v15, %v531_v8 }
  0xab   :  { %247 = vperm.xlu1 %1382, %v170_v35  }
  0xac   :  { %v134_v43 = vpop.permute.xlu0 %133  ;;  %v571_v22 = vpop.permute.xlu1 %570 }
  0xad   :  { %262 = vperm.xlu0 %1383, %v175_v37   ;;  %v178_v50 = vmul.f32 %v134_v43, %v78_v25  ;;  %v194_v9 = vmul.f32 %v134_v43, %v82_v47  ;;  %v627_v33 = vmul.f32 %v571_v22, %v531_v8 }
  0xaf   :  { %253 = vperm.xlu1 %1382, %v172_v39  }
  0xb0   :  { %v142_v49 = vpop.permute.xlu0 %141  ;;  %v579_v28 = vpop.permute.xlu1 %578 }
  0xb1   :  { %268 = vperm.xlu0 %1383, %v177_v40   ;;  %v180_v52 = vmul.f32 %v142_v49, %v78_v25  ;;  %v196_v13 = vmul.f32 %v142_v49, %v82_v47  ;;  %v629_v37 = vmul.f32 %v579_v28, %v531_v8  ;;  %v535_v40 = vrot.slane %v1457_v29, %v530_v4 }
  0xb3   :  { %259 = vperm.xlu1 %1382, %v174_v42  }
  0xb4   :  { %v150_v53 = vpop.permute.xlu0 %149  ;;  %v587_v34 = vpop.permute.xlu1 %586 }
  0xb5   :  { %274 = vperm.xlu0 %1383, %v179_v44   ;;  %v182_v55 = vmul.f32 %v150_v53, %v78_v25  ;;  %v198_v16 = vmul.f32 %v150_v53, %v82_v47  ;;  %v631_v41 = vmul.f32 %v587_v34, %v531_v8 }
  0xb7   :  { %265 = vperm.xlu1 %1382, %v176_v45  }
  0xb8   :  { %v1464_v60 = vpop.permute.xlu0 %542  ;;  %v595_v39 = vpop.permute.xlu1 %594 }
  0xb9   :  { %280 = vperm.xlu0 %1383, %v181_v48   ;;  %v620_v11 = vmul.f32 %v1464_v60, %v531_v8  ;;  %v636_v42 = vmul.f32 %v1464_v60, %v535_v40  ;;  %v633_v43 = vmul.f32 %v595_v39, %v531_v8  ;;  %v637_v48 = vmul.f32 %v1470_v3, %v535_v40 }
  0xba   :  { %v1487_v60 = vand.u32 127, %v75_v19 }
  0xbb   :  { %271 = vperm.xlu1 %1382, %v178_v50   ;;  %v639_v50 = vmul.f32 %v555_v10, %v535_v40 }
  0xbc   :  { %v1467_v0 = vpop.permute.xlu0 %550  ;;  %v603_v44 = vpop.permute.xlu1 %602  ;;  %v1495_v3 = vsub.s32 %v1487_v60, %v1449_v21  ;;  %v353_v4 = vadd.s32 4294967272, %v1487_v60 }
  0xbd   :  { %286 = vperm.xlu0 %1383, %v183_v51   ;;  %v622_v14 = vmul.f32 %v1467_v0, %v531_v8  ;;  %v638_v45 = vmul.f32 %v1467_v0, %v535_v40  ;;  %v635_v46 = vmul.f32 %v603_v44, %v531_v8  ;;  %v346_v0 = vadd.s32 4294967280, %v1487_v60 }
  0xbf   :  { %277 = vperm.xlu1 %1382, %v180_v52   ;;  %v641_v52 = vmul.f32 %v563_v15, %v535_v40 }
  0xc0   :  { %v559_v6 = vpop.permute.xlu0 %558 }
  0xc1   :  { %292 = vperm.xlu0 %1383, %v185_v54   ;;  %v624_v18 = vmul.f32 %v559_v6, %v531_v8  ;;  %v640_v47 = vmul.f32 %v559_v6, %v535_v40  ;;  %v643_v54 = vmul.f32 %v571_v22, %v535_v40  ;;  %v1502_v6 = vsub.s32 %v346_v0, %v1449_v21 }
  0xc3   :  { %283 = vperm.xlu1 %1382, %v182_v55  }
  0xc4   :  { %v567_v12 = vpop.permute.xlu0 %566 }
  0xc5   :  { %298 = vperm.xlu0 %1383, %v187_v56   ;;  %v626_v23 = vmul.f32 %v567_v12, %v531_v8  ;;  %v642_v49 = vmul.f32 %v567_v12, %v535_v40  ;;  %v645_v56 = vmul.f32 %v579_v28, %v535_v40  ;;  %v367_v12 = vadd.s32 4294967256, %v1487_v60 }
  0xc7   :  { %289 = vperm.xlu1 %1382, %v184_v57   ;;  %v1522_v22 = vsub.s32 %v367_v12, %v1449_v21 }
  0xc8   :  { %v575_v17 = vpop.permute.xlu0 %574 }
  0xc9   :  { %304 = vperm.xlu0 %1383, %v189_v58   ;;  %v628_v27 = vmul.f32 %v575_v17, %v531_v8  ;;  %v644_v51 = vmul.f32 %v575_v17, %v535_v40  ;;  %v647_v58 = vmul.f32 %v587_v34, %v535_v40 }
  0xcb   :  { %295 = vperm.xlu1 %1382, %v186_v59   ;;  %v1484_v59 = vld [vmem:[%s1807_s1 + $0x2] ss:$0 sm:$0xff] }
  0xcc   :  { %v583_v25 = vpop.permute.xlu0 %582 }
  0xcd   :  { %310 = vperm.xlu0 %1383, %v191_v61   ;;  %v630_v32 = vmul.f32 %v583_v25, %v531_v8  ;;  %v646_v53 = vmul.f32 %v583_v25, %v535_v40  ;;  %v649_v61 = vmul.f32 %v595_v39, %v535_v40 }
  0xcf   :  { %301 = vperm.xlu1 %1382, %v188_v62   ;;  %v339_v62 = vadd.s32 4294967288, %v1487_v60 }
  0xd0   :  { %v591_v31 = vpop.permute.xlu0 %590 }
  0xd1   :  { %316 = vperm.xlu0 %1383, %v193_v63   ;;  %v632_v35 = vmul.f32 %v591_v31, %v531_v8  ;;  %v648_v55 = vmul.f32 %v591_v31, %v535_v40  ;;  %v1498_v19 = vsub.s32 %v339_v62, %v1449_v21  ;;  %v388_v31 = vadd.s32 4294967232, %v1487_v60 }
  0xd3   :  { %307 = vperm.xlu1 %1382, %v190_v1   ;;  %v651_v1 = vmul.f32 %v603_v44, %v535_v40 }
  0xd4   :  { %v599_v36 = vpop.permute.xlu0 %598 }
  0xd5   :  { %322 = vperm.xlu0 %1383, %v195_v2   ;;  %v634_v38 = vmul.f32 %v599_v36, %v531_v8  ;;  %v650_v57 = vmul.f32 %v599_v36, %v535_v40  ;;  %v1545_v40 = vsub.s32 %v388_v31, %v1449_v21 }
  0xd7   :  { %313 = vperm.xlu1 %1382, %v192_v5  }
  0xd9   :  { %328 = vperm.xlu0 %1383, %v197_v7   ;;  %v360_v7 = vadd.s32 4294967264, %v1487_v60 }
  0xdb   :  { %319 = vperm.xlu1 %1382, %v194_v9   ;;  %v1516_v15 = vsub.s32 %v360_v7, %v1449_v21 }
  0xdd   :  { %685 = vperm.xlu0 %1383, %v620_v11   ;;  %v1509_v11 = vsub.s32 %v353_v4, %v1449_v21  ;;  %v437_v4 = vadd.s32 4294967176, %v1487_v60 }
  0xdf   :  { %325 = vperm.xlu1 %1382, %v196_v13  }
  0xe1   :  { %691 = vperm.xlu0 %1383, %v622_v14  }
  0xe3   :  { %331 = vperm.xlu1 %1382, %v198_v16   ;;  %v374_v16 = vadd.s32 4294967248, %v1487_v60 }
  0xe5   :  { %697 = vperm.xlu0 %1383, %v624_v18  }
  0xe7   :  { %688 = vperm.xlu1 %1382, %v621_v20  }
  0xe9   :  { %703 = vperm.xlu0 %1383, %v626_v23   ;;  %v381_v23 = vadd.s32 4294967240, %v1487_v60 }
  0xeb   :  { %694 = vperm.xlu1 %1382, %v623_v26   ;;  %v1536_v34 = vsub.s32 %v381_v23, %v1449_v21 }
  0xed   :  { %709 = vperm.xlu0 %1383, %v628_v27  }
  0xef   :  { %700 = vperm.xlu1 %1382, %v625_v30   ;;  %v1531_v30 = vsub.s32 %v374_v16, %v1449_v21 }
  0xf1   :  { %715 = vperm.xlu0 %1383, %v630_v32  }
  0xf3   :  { %706 = vperm.xlu1 %1382, %v627_v33  }
  0xf5   :  { %721 = vperm.xlu0 %1383, %v632_v35   ;;  %v395_v35 = vadd.s32 4294967224, %v1487_v60 }
  0xf7   :  { %712 = vperm.xlu1 %1382, %v629_v37   ;;  %v1550_v44 = vsub.s32 %v395_v35, %v1449_v21 }
  0xf9   :  { %727 = vperm.xlu0 %1383, %v634_v38  }
  0xfb   :  { %718 = vperm.xlu1 %1382, %v631_v41   ;;  %v402_v41 = vadd.s32 4294967216, %v1487_v60 }
  0xfd   :  { %733 = vperm.xlu0 %1383, %v636_v42  }
  0xff   :  { %724 = vperm.xlu1 %1382, %v633_v43  }
 0x101   :  { %739 = vperm.xlu0 %1383, %v638_v45   ;;  %v409_v45 = vadd.s32 4294967208, %v1487_v60 }
 0x103   :  { %730 = vperm.xlu1 %1382, %v635_v46  }
 0x105   :  { %745 = vperm.xlu0 %1383, %v640_v47  }
 0x107   :  { %736 = vperm.xlu1 %1382, %v637_v48  }
 0x109   :  { %751 = vperm.xlu0 %1383, %v642_v49  }
 0x10b   :  { %742 = vperm.xlu1 %1382, %v639_v50   ;;  %v1559_v50 = vsub.s32 %v402_v41, %v1449_v21 }
 0x10d   :  { %757 = vperm.xlu0 %1383, %v644_v51   ;;  %v416_v51 = vadd.s32 4294967200, %v1487_v60 }
 0x10f   :  { %748 = vperm.xlu1 %1382, %v641_v52   ;;  %v1573_v62 = vsub.s32 %v416_v51, %v1449_v21 }
 0x111   :  { %763 = vperm.xlu0 %1383, %v646_v53  }
 0x113   :  { %754 = vperm.xlu1 %1382, %v643_v54   ;;  %v1564_v54 = vsub.s32 %v409_v45, %v1449_v21 }
 0x115   :  { %769 = vperm.xlu0 %1383, %v648_v55   ;;  %v423_v55 = vadd.s32 4294967192, %v1487_v60 }
 0x117   :  { %760 = vperm.xlu1 %1382, %v645_v56  }
 0x119   :  { %775 = vperm.xlu0 %1383, %v650_v57  }
 0x11b   :  { %766 = vperm.xlu1 %1382, %v647_v58  }
 0x11d   :  { %956 = vbcast.lane.b32.xlu0 %v1484_v59, 256 }
 0x11f   :  { %772 = vperm.xlu1 %1382, %v649_v61  }
 0x120   :  { %v242_v63 = vpop.permute.xlu0 %241  ;;  %v239_v2 = vpop.permute.xlu1 %238 }
 0x121   :  { %964 = vbcast.lane.b32.xlu0 %v1484_v59, 272  ;;  %v338_v9 = vrot.slane %v239_v2, %v1495_v3  ;;  %v343_v10 = vrot.slane %v242_v63, %v1498_v19  ;;  %v430_v63 = vadd.s32 4294967184, %v1487_v60  ;;  %v1578_v2 = vsub.s32 %v423_v55, %v1449_v21 }
 0x123   :  { %778 = vperm.xlu1 %1382, %v651_v1   ;;  %v345_v18 = vsel %vm344_vm1, %v343_v10, %v338_v9  ;;  %v1586_v10 = vsub.s32 %v430_v63, %v1449_v21 }
 0x124   :  { %v251_v5 = vpop.permute.xlu0 %250 }
 0x125   :  { %972 = vbcast.lane.b32.xlu0 %v1484_v59, 288  ;;  %v364_v28 = vrot.slane %v251_v5, %v1516_v15 }
 0x126   :  { %v245_v8 = vpop.permute.xlu1 %244 }
 0x127   :  { %960 = vbcast.lane.b32.xlu1 %v1484_v59, 264  ;;  %v350_v13 = vrot.slane %v245_v8, %v1502_v6 }
 0x128   :  { %v257_v14 = vpop.permute.xlu0 %256 }
 0x129   :  { %980 = vbcast.lane.b32.xlu0 %v1484_v59, 304  ;;  %v352_v25 = vsel %vm351_vm2, %v350_v13, %v345_v18  ;;  %v378_v39 = vrot.slane %v257_v14, %v1531_v30  ;;  %v1590_v14 = vsub.s32 %v437_v4, %v1449_v21 }
 0x12a   :  { %v248_v17 = vpop.permute.xlu1 %247 }
 0x12b   :  { %v357_v20 = vrot.slane %v248_v17, %v1509_v11  ;;  %968 = vbcast.lane.b32.xlu1 %v1484_v59, 280 }
 0x12c   :  { %v263_v26 = vpop.permute.xlu0 %262 }
 0x12d   :  { %v359_v27 = vsel %vm358_vm3, %v357_v20, %v352_v25  ;;  %988 = vbcast.lane.b32.xlu0 %v1484_v59, 320  ;;  %v392_v49 = vrot.slane %v263_v26, %v1545_v40 }
 0x12e   :  { %v254_v32 = vpop.permute.xlu1 %253  ;;  %v366_v36 = vsel %vm365_vm4, %v364_v28, %v359_v27 }
 0x12f   :  { %v371_v33 = vrot.slane %v254_v32, %v1522_v22  ;;  %976 = vbcast.lane.b32.xlu1 %v1484_v59, 296 }
 0x130   :  { %v269_v37 = vpop.permute.xlu0 %268 }
 0x131   :  { %v373_v38 = vsel %vm372_vm5, %v371_v33, %v366_v36  ;;  %996 = vbcast.lane.b32.xlu0 %v1484_v59, 336  ;;  %v406_v61 = vrot.slane %v269_v37, %v1559_v50 }
 0x132   :  { %v260_v42 = vpop.permute.xlu1 %259  ;;  %v380_v46 = vsel %vm379_vm6, %v378_v39, %v373_v38 }
 0x133   :  { %v385_v43 = vrot.slane %v260_v42, %v1536_v34  ;;  %984 = vbcast.lane.b32.xlu1 %v1484_v59, 312 }
 0x134   :  { %v275_v47 = vpop.permute.xlu0 %274 }
 0x135   :  { %v387_v48 = vsel %vm386_vm7, %v385_v43, %v380_v46  ;;  %1004 = vbcast.lane.b32.xlu0 %v1484_v59, 352  ;;  %v420_v9 = vrot.slane %v275_v47, %v1573_v62 }
 0x136   :  { %v266_v52 = vpop.permute.xlu1 %265  ;;  %v394_v56 = vsel %vm393_vm8, %v392_v49, %v387_v48 }
 0x137   :  { %v399_v53 = vrot.slane %v266_v52, %v1550_v44  ;;  %992 = vbcast.lane.b32.xlu1 %v1484_v59, 328 }
 0x138   :  { %v281_v57 = vpop.permute.xlu0 %280 }
 0x139   :  { %v401_v58 = vsel %vm400_vm9, %v399_v53, %v394_v56  ;;  %1012 = vbcast.lane.b32.xlu0 %v1484_v59, 368  ;;  %v434_v18 = vrot.slane %v281_v57, %v1586_v10 }
 0x13a   :  { %v272_v0 = vpop.permute.xlu1 %271  ;;  %v408_v5 = vsel %vm407_vm10, %v406_v61, %v401_v58 }
 0x13b   :  { %v413_v1 = vrot.slane %v272_v0, %v1564_v54  ;;  %1000 = vbcast.lane.b32.xlu1 %v1484_v59, 344 }
 0x13c   :  { %v287_v7 = vpop.permute.xlu0 %286 }
 0x13d   :  { %v415_v8 = vsel %vm414_vm11, %v413_v1, %v408_v5  ;;  %v447_v31 = vrot.slane %v287_v7, %v1495_v3 }
 0x13e   :  { %v278_v12 = vpop.permute.xlu1 %277  ;;  %v422_v60 = vsel %vm421_vm12, %v420_v9, %v415_v8 }
 0x13f   :  { %v427_v13 = vrot.slane %v278_v12, %v1578_v2  ;;  %1008 = vbcast.lane.b32.xlu1 %v1484_v59, 360 }
 0x140   :  { %v293_v16 = vpop.permute.xlu0 %292 }
 0x141   :  { %v429_v17 = vsel %vm428_vm13, %v427_v13, %v422_v60  ;;  %v456_v33 = vrot.slane %v293_v16, %v1502_v6 }
 0x142   :  { %v284_v20 = vpop.permute.xlu1 %283  ;;  %v436_v25 = vsel %vm435_vm14, %v434_v18, %v429_v17 }
 0x143   :  { %v441_v23 = vrot.slane %v284_v20, %v1590_v14  ;;  %1016 = vbcast.lane.b32.xlu1 %v1484_v59, 376 }
 0x144   :  { %v299_v26 = vpop.permute.xlu0 %298 }
 0x145   :  { %v443_v27 = vsel %vm442_vm15, %v441_v23, %v436_v25  ;;  %v466_v39 = vrot.slane %v299_v26, %v1516_v15 }
 0x146   :  { %v290_v28 = vpop.permute.xlu1 %289 }
 0x147   :  { %v451_v32 = vrot.slane %v290_v28, %v1498_v19 }
 0x148   :  { %v305_v35 = vpop.permute.xlu0 %304 }
 0x149   :  { %v452_v36 = vsel %vm344_vm1, %v451_v32, %v447_v31  ;;  %v476_v47 = vrot.slane %v305_v35, %v1531_v30 }
 0x14a   :  { %v296_v37 = vpop.permute.xlu1 %295  ;;  %v457_v38 = vsel %vm351_vm2, %v456_v33, %v452_v36 }
 0x14b   :  { %v461_v59 = vrot.slane %v296_v37, %v1509_v11 }
 0x14c   :  { %v311_v41 = vpop.permute.xlu0 %310 }
 0x14d   :  { %v462_v42 = vsel %vm358_vm3, %v461_v59, %v457_v38  ;;  %v486_v55 = vrot.slane %v311_v41, %v1545_v40 }
 0x14e   :  { %v302_v43 = vpop.permute.xlu1 %301  ;;  %v467_v45 = vsel %vm365_vm4, %v466_v39, %v462_v42 }
 0x14f   :  { %v471_v46 = vrot.slane %v302_v43, %v1522_v22 }
 0x150   :  { %v317_v48 = vpop.permute.xlu0 %316 }
 0x151   :  { %v472_v49 = vsel %vm372_vm5, %v471_v46, %v467_v45  ;;  %v496_v0 = vrot.slane %v317_v48, %v1559_v50 }
 0x152   :  { %v308_v51 = vpop.permute.xlu1 %307  ;;  %v477_v52 = vsel %vm379_vm6, %v476_v47, %v472_v49 }
 0x153   :  { %v481_v53 = vrot.slane %v308_v51, %v1536_v34 }
 0x154   :  { %v323_v56 = vpop.permute.xlu0 %322 }
 0x155   :  { %v482_v57 = vsel %vm386_vm7, %v481_v53, %v477_v52  ;;  %v506_v9 = vrot.slane %v323_v56, %v1573_v62 }
 0x156   :  { %v314_v58 = vpop.permute.xlu1 %313  ;;  %v487_v61 = vsel %vm393_vm8, %v486_v55, %v482_v57 }
 0x157   :  { %v491_v63 = vrot.slane %v314_v58, %v1550_v44 }
 0x158   :  { %v329_v1 = vpop.permute.xlu0 %328 }
 0x159   :  { %v492_v4 = vsel %vm400_vm9, %v491_v63, %v487_v61  ;;  %v516_v18 = vrot.slane %v329_v1, %v1586_v10 }
 0x15a   :  { %v320_v5 = vpop.permute.xlu1 %319  ;;  %v497_v7 = vsel %vm407_vm10, %v496_v0, %v492_v4 }
 0x15b   :  { %v501_v8 = vrot.slane %v320_v5, %v1564_v54 }
 0x15c   :  { %v686_v12 = vpop.permute.xlu0 %685 }
 0x15d   :  { %v502_v13 = vsel %vm414_vm11, %v501_v8, %v497_v7  ;;  %v783_v36 = vrot.slane %v686_v12, %v1495_v3 }
 0x15e   :  { %v326_v60 = vpop.permute.xlu1 %325  ;;  %v507_v16 = vsel %vm421_vm12, %v506_v9, %v502_v13 }
 0x15f   :  { %v511_v17 = vrot.slane %v326_v60, %v1578_v2 }
 0x160   :  { %v692_v20 = vpop.permute.xlu0 %691 }
 0x161   :  { %v512_v23 = vsel %vm428_vm13, %v511_v17, %v507_v16  ;;  %v792_v38 = vrot.slane %v692_v20, %v1502_v6 }
 0x162   :  { %v332_v25 = vpop.permute.xlu1 %331  ;;  %v517_v26 = vsel %vm435_vm14, %v516_v18, %v512_v23 }
 0x163   :  { %v521_v28 = vrot.slane %v332_v25, %v1590_v14 }
 0x164   :  { %v698_v31 = vpop.permute.xlu0 %697 }
 0x165   :  { %v522_v32 = vsel %vm442_vm15, %v521_v28, %v517_v26  ;;  %v802_v45 = vrot.slane %v698_v31, %v1516_v15 }
 0x166   :  { %v689_v33 = vpop.permute.xlu1 %688  ;;  %v1632_v35 = vsel %vm523_vm0, %v522_v32, %v443_v27 }
 0x167   :  { %v787_v37 = vrot.slane %v689_v33, %v1498_v19 }
 0x168   :  { %v704_v59 = vpop.permute.xlu0 %703 }
 0x169   :  { %v788_v39 = vsel %vm344_vm1, %v787_v37, %v783_v36  ;;  %v812_v51 = vrot.slane %v704_v59, %v1531_v30 }
 0x16a   :  { %v695_v41 = vpop.permute.xlu1 %694  ;;  %v793_v42 = vsel %vm351_vm2, %v792_v38, %v788_v39 }
 0x16b   :  { %v797_v43 = vrot.slane %v695_v41, %v1509_v11 }
 0x16c   :  { %v710_v46 = vpop.permute.xlu0 %709 }
 0x16d   :  { %v798_v27 = vsel %vm358_vm3, %v797_v43, %v793_v42  ;;  %v822_v58 = vrot.slane %v710_v46, %v1545_v40 }
 0x16e   :  { %v701_v47 = vpop.permute.xlu1 %700  ;;  %v803_v48 = vsel %vm365_vm4, %v802_v45, %v798_v27 }
 0x16f   :  { %v807_v49 = vrot.slane %v701_v47, %v1522_v22 }
 0x170   :  { %v716_v52 = vpop.permute.xlu0 %715 }
 0x171   :  { %v808_v53 = vsel %vm372_vm5, %v807_v49, %v803_v48  ;;  %v832_v5 = vrot.slane %v716_v52, %v1559_v50 }
 0x172   :  { %v707_v55 = vpop.permute.xlu1 %706  ;;  %v813_v56 = vsel %vm379_vm6, %v812_v51, %v808_v53 }
 0x173   :  { %v817_v57 = vrot.slane %v707_v55, %v1536_v34 }
 0x174   :  { %v722_v61 = vpop.permute.xlu0 %721 }
 0x175   :  { %v818_v63 = vsel %vm386_vm7, %v817_v57, %v813_v56  ;;  %v842_v60 = vrot.slane %v722_v61, %v1573_v62 }
 0x176   :  { %v713_v0 = vpop.permute.xlu1 %712  ;;  %v823_v1 = vsel %vm393_vm8, %v822_v58, %v818_v63 }
 0x177   :  { %v827_v4 = vrot.slane %v713_v0, %v1550_v44 }
 0x178   :  { %v728_v7 = vpop.permute.xlu0 %727 }
 0x179   :  { %v828_v8 = vsel %vm400_vm9, %v827_v4, %v823_v1  ;;  %v852_v25 = vrot.slane %v728_v7, %v1586_v10 }
 0x17a   :  { %v719_v9 = vpop.permute.xlu1 %718  ;;  %v833_v12 = vsel %vm407_vm10, %v832_v5, %v828_v8  ;;  %v944_v8 = vsub.s32 2, %v1449_v21 }
 0x17b   :  { %v837_v13 = vrot.slane %v719_v9, %v1564_v54 }
 0x17c   :  { %v734_v16 = vpop.permute.xlu0 %733 }
 0x17d   :  { %v838_v17 = vsel %vm414_vm11, %v837_v13, %v833_v12  ;;  %v862_v59 = vrot.slane %v734_v16, %v1495_v3 }
 0x17e   :  { %v725_v18 = vpop.permute.xlu1 %724  ;;  %v843_v20 = vsel %vm421_vm12, %v842_v60, %v838_v17 }
 0x17f   :  { %v847_v23 = vrot.slane %v725_v18, %v1578_v2  ;;  %v1688_v18 = vrot.slane %v1452_v24, %v944_v8 }
 0x180   :  { %v740_v26 = vpop.permute.xlu0 %739 }
 0x181   :  { %v848_v28 = vsel %vm428_vm13, %v847_v23, %v843_v20  ;;  %v871_v41 = vrot.slane %v740_v26, %v1502_v6 }
 0x182   :  { %v731_v31 = vpop.permute.xlu1 %730  ;;  %v853_v32 = vsel %vm435_vm14, %v852_v25, %v848_v28 }
 0x183   :  { %v857_v33 = vrot.slane %v731_v31, %v1590_v14 }
 0x184   :  { %v746_v36 = vpop.permute.xlu0 %745 }
 0x185   :  { %v858_v37 = vsel %vm442_vm15, %v857_v33, %v853_v32  ;;  %v881_v47 = vrot.slane %v746_v36, %v1516_v15 }
 0x186   :  { %v737_v38 = vpop.permute.xlu1 %736 }
 0x187   :  { %v866_v39 = vrot.slane %v737_v38, %v1498_v19 }
 0x188   :  { %v752_v42 = vpop.permute.xlu0 %751 }
 0x189   :  { %v867_v43 = vsel %vm344_vm1, %v866_v39, %v862_v59  ;;  %v891_v55 = vrot.slane %v752_v42, %v1531_v30 }
 0x18a   :  { %v743_v45 = vpop.permute.xlu1 %742  ;;  %v872_v46 = vsel %vm351_vm2, %v871_v41, %v867_v43  ;;  %v1377_v41 = vld [vmem:[%s1808_s2] ss:$0 sm:$0xff]  ;;  %s1411_s2 = smov [#allocation3]  }
 0x18b   :  { %v876_v27 = vrot.slane %v743_v45, %v1509_v11  ;;  %s1362_s22 = sshll.u32 %s1411_s2, 4  ;;  %s1363_s22 = int_to_ptr.vmem [resolvable:$true] %s1362_s22 }
 0x18c   :  { %v758_v48 = vpop.permute.xlu0 %757  ;;  %s1386_s23 = scalar_lea.vmem %s1363_s22, 32  ;;  %p1391_p1 = scmp.lt.s32.totalorder %s1363_s22, %s1363_s22 }
 0x18d   :  { %v877_v49 = vsel %vm358_vm3, %v876_v27, %v872_v46  ;;  %v901_v0 = vrot.slane %v758_v48, %v1545_v40  ;;  %v526_v27 = vadd.f32 %v1377_v41, %v1632_v35  ;;  %p1387_p0 = scmp.ne.s32.totalorder %s1363_s22, %s1386_s23  ;;  %p1392_p2 = scmp.lt.s32.totalorder %s1386_s23, %s1386_s23 }
 0x18e   :  { %v749_v51 = vpop.permute.xlu1 %748  ;;  %v882_v52 = vsel %vm365_vm4, %v881_v47, %v877_v49 }
 0x18f   :  { %v886_v53 = vrot.slane %v749_v51, %v1522_v22  ;;  %p1393_p3 = por %p1392_p2, %p1391_p1 }
 0x190   :  { %v764_v56 = vpop.permute.xlu0 %763 }
 0x191   :  { %v887_v57 = vsel %vm372_vm5, %v886_v53, %v882_v52  ;;  %v911_v12 = vrot.slane %v764_v56, %v1559_v50  ;;  %p1394_p4 = pnand %p1393_p3, %p1387_p0 }
 0x192   :  { %v755_v58 = vpop.permute.xlu1 %754  ;;  %v892_v61 = vsel %vm379_vm6, %v891_v55, %v887_v57 }
 0x193   :  { %v896_v63 = vrot.slane %v755_v58, %v1536_v34 }
 0x194   :  { %v770_v1 = vpop.permute.xlu0 %769 }
 0x195   :  { %v897_v4 = vsel %vm386_vm7, %v896_v63, %v892_v61  ;;  %v921_v23 = vrot.slane %v770_v1, %v1573_v62  ;;  %v949_v1 = vrot.slane %v1457_v29, %v944_v8 }
 0x196   :  { %v761_v5 = vpop.permute.xlu1 %760  ;;  %v902_v7 = vsel %vm393_vm8, %v901_v0, %v897_v4 }
 0x197   :  { %v906_v9 = vrot.slane %v761_v5, %v1550_v44 }
 0x198   :  { %v776_v13 = vpop.permute.xlu0 %775 }
 0x199   :  { %v907_v60 = vsel %vm400_vm9, %v906_v9, %v902_v7  ;;  %v931_v33 = vrot.slane %v776_v13, %v1586_v10 }
 0x19a   :  { %v767_v16 = vpop.permute.xlu1 %766  ;;  %v912_v17 = vsel %vm407_vm10, %v911_v12, %v907_v60 }
 0x19b   :  { %v916_v20 = vrot.slane %v767_v16, %v1564_v54 }
 0x19c   :  { %v957_v25 = vpop.permute.xlu0 %956 }
 0x19d   :  { %v917_v21 = vsel %vm414_vm11, %v916_v20, %v912_v17  ;;  %v1034_v26 = vmul.f32 %v957_v25, %v1688_v18  ;;  %v1050_v13 = vmul.f32 %v957_v25, %v949_v1 }
 0x19e   :  { %v773_v28 = vpop.permute.xlu1 %772  ;;  %v922_v31 = vsel %vm421_vm12, %v921_v23, %v917_v21 }
 0x19f   :  { %v926_v32 = vrot.slane %v773_v28, %v1578_v2  ;;  %1099 = vperm.xlu0 %1383, %v1034_v26  }
 0x1a0   :  { %v965_v36 = vpop.permute.xlu0 %964 }
 0x1a1   :  { %v927_v24 = vsel %vm428_vm13, %v926_v32, %v922_v31  ;;  %v1036_v38 = vmul.f32 %v965_v36, %v1688_v18  ;;  %v1052_v16 = vmul.f32 %v965_v36, %v949_v1 }
 0x1a2   :  { %v779_v59 = vpop.permute.xlu1 %778  ;;  %v932_v39 = vsel %vm435_vm14, %v931_v33, %v927_v24 }
 0x1a3   :  { %v936_v42 = vrot.slane %v779_v59, %v1590_v14  ;;  %1105 = vperm.xlu0 %1383, %v1036_v38  }
 0x1a4   :  { %v973_v43 = vpop.permute.xlu0 %972 }
 0x1a5   :  { %v937_v45 = vsel %vm442_vm15, %v936_v42, %v932_v39  ;;  %v1038_v46 = vmul.f32 %v973_v43, %v1688_v18  ;;  %v1054_v29 = vmul.f32 %v973_v43, %v949_v1 }
 0x1a6   :  { %v961_v47 = vpop.permute.xlu1 %960  ;;  %v938_v48 = vsel %vm523_vm0, %v937_v45, %v858_v37 }
 0x1a7   :  { %v1035_v49 = vmul.f32 %v961_v47, %v1688_v18  ;;  %1111 = vperm.xlu0 %1383, %v1038_v46   ;;  %v1709_v51 = vadd.f32 %v938_v48, %v526_v27  ;;  %v1051_v5 = vmul.f32 %v961_v47, %v949_v1 }
 0x1a8   :  { %v981_v52 = vpop.permute.xlu0 %980 }
 0x1a9   :  { %v1040_v53 = vmul.f32 %v981_v52, %v1688_v18  ;;  %1102 = vperm.xlu1 %1382, %v1035_v49   ;;  %v1056_v23 = vmul.f32 %v981_v52, %v949_v1 }
 0x1aa   :  { %v969_v55 = vpop.permute.xlu1 %968 }
 0x1ab   :  { %v1037_v56 = vmul.f32 %v969_v55, %v1688_v18  ;;  %1117 = vperm.xlu0 %1383, %v1040_v53   ;;  %v1053_v12 = vmul.f32 %v969_v55, %v949_v1 }
 0x1ac   :  { %v989_v57 = vpop.permute.xlu0 %988 }
 0x1ad   :  { %v1042_v58 = vmul.f32 %v989_v57, %v1688_v18  ;;  %1108 = vperm.xlu1 %1382, %v1037_v56   ;;  %v1058_v28 = vmul.f32 %v989_v57, %v949_v1 }
 0x1ae   :  { %v977_v35 = vpop.permute.xlu1 %976 }
 0x1af   :  { %v1039_v37 = vmul.f32 %v977_v35, %v1688_v18  ;;  %1123 = vperm.xlu0 %1383, %v1042_v58   ;;  %v1055_v60 = vmul.f32 %v977_v35, %v949_v1 }
 0x1b0   :  { %v997_v61 = vpop.permute.xlu0 %996 }
 0x1b1   :  { %v1044_v63 = vmul.f32 %v997_v61, %v1688_v18  ;;  %1114 = vperm.xlu1 %1382, %v1039_v37   ;;  %v1060_v32 = vmul.f32 %v997_v61, %v949_v1 }
 0x1b2   :  { %v985_v0 = vpop.permute.xlu1 %984 }
 0x1b3   :  { %v1041_v4 = vmul.f32 %v985_v0, %v1688_v18  ;;  %1129 = vperm.xlu0 %1383, %v1044_v63   ;;  %v1057_v17 = vmul.f32 %v985_v0, %v949_v1 }
 0x1b4   :  { %v1005_v26 = vpop.permute.xlu0 %1004 }
 0x1b5   :  { %1120 = vperm.xlu1 %1382, %v1041_v4   ;;  %v1046_v25 = vmul.f32 %v1005_v26, %v1688_v18  ;;  %v1062_v39 = vmul.f32 %v1005_v26, %v949_v1 }
 0x1b6   :  { %v993_v7 = vpop.permute.xlu1 %992 }
 0x1b7   :  { %v1043_v9 = vmul.f32 %v993_v7, %v1688_v18  ;;  %1150 = vperm.xlu0 %1383, %v1051_v5   ;;  %v1059_v8 = vmul.f32 %v993_v7, %v949_v1 }
 0x1b8   :  { %v1013_v36 = vpop.permute.xlu0 %1012 }
 0x1b9   :  { %1126 = vperm.xlu1 %1382, %v1043_v9   ;;  %v1048_v38 = vmul.f32 %v1013_v36, %v1688_v18  ;;  %v1064_v43 = vmul.f32 %v1013_v36, %v949_v1 }
 0x1ba   :  { %v1001_v20 = vpop.permute.xlu1 %1000 }
 0x1bb   :  { %1156 = vperm.xlu0 %1383, %v1053_v12   ;;  %v1045_v21 = vmul.f32 %v1001_v20, %v1688_v18  ;;  %v1061_v24 = vmul.f32 %v1001_v20, %v949_v1 }
 0x1bd   :  { %1147 = vperm.xlu1 %1382, %v1050_v13  }
 0x1be   :  { %v1009_v31 = vpop.permute.xlu1 %1008 }
 0x1bf   :  { %1162 = vperm.xlu0 %1383, %v1055_v60   ;;  %v1047_v33 = vmul.f32 %v1009_v31, %v1688_v18  ;;  %v1063_v42 = vmul.f32 %v1009_v31, %v949_v1 }
 0x1c1   :  { %1153 = vperm.xlu1 %1382, %v1052_v16  }
 0x1c2   :  { %v1017_v59 = vpop.permute.xlu1 %1016 }
 0x1c3   :  { %1168 = vperm.xlu0 %1383, %v1057_v17   ;;  %v1049_v41 = vmul.f32 %v1017_v59, %v1688_v18  ;;  %v1065_v45 = vmul.f32 %v1017_v59, %v949_v1 }
 0x1c5   :  { %1159 = vperm.xlu1 %1382, %v1054_v29  }
 0x1c7   :  { %1174 = vperm.xlu0 %1383, %v1059_v8  }
 0x1c9   :  { %1165 = vperm.xlu1 %1382, %v1056_v23  }
 0x1cb   :  { %1132 = vperm.xlu0 %1383, %v1045_v21  }
 0x1cd   :  { %1171 = vperm.xlu1 %1382, %v1058_v28  }
 0x1cf   :  { %1135 = vperm.xlu0 %1383, %v1046_v25  }
 0x1d1   :  { %1177 = vperm.xlu1 %1382, %v1060_v32  }
 0x1d3   :  { %1138 = vperm.xlu0 %1383, %v1047_v33  }
 0x1d5   :  { %1180 = vperm.xlu1 %1382, %v1061_v24  }
 0x1d7   :  { %1141 = vperm.xlu0 %1383, %v1048_v38  }
 0x1d9   :  { %1183 = vperm.xlu1 %1382, %v1062_v39  }
 0x1db   :  { %1144 = vperm.xlu0 %1383, %v1049_v41  }
 0x1dd   :  { %1186 = vperm.xlu1 %1382, %v1063_v42  }
 0x1e1   :  { %1189 = vperm.xlu1 %1382, %v1064_v43  }
 0x1e5   :  { %1192 = vperm.xlu1 %1382, %v1065_v45  }
 0x21e   :  { %v1100_v46 = vpop.permute.xlu0 %1099 }
 0x21f   :  { %v1197_v13 = vrot.slane %v1100_v46, %v1495_v3 }
 0x222   :  { %v1106_v27 = vpop.permute.xlu0 %1105 }
 0x223   :  { %v1206_v23 = vrot.slane %v1106_v27, %v1502_v6 }
 0x226   :  { %v1112_v47 = vpop.permute.xlu0 %1111 }
 0x227   :  { %v1216_v36 = vrot.slane %v1112_v47, %v1516_v15 }
 0x228   :  { %v1103_v48 = vpop.permute.xlu1 %1102 }
 0x229   :  { %v1201_v9 = vrot.slane %v1103_v48, %v1498_v19 }
 0x22a   :  { %v1118_v49 = vpop.permute.xlu0 %1117 }
 0x22b   :  { %v1202_v29 = vsel %vm344_vm1, %v1201_v9, %v1197_v13 }
 0x22c   :  { %v1109_v52 = vpop.permute.xlu1 %1108  ;;  %v1207_v28 = vsel %vm351_vm2, %v1206_v23, %v1202_v29 }
 0x22d   :  { %v1211_v8 = vrot.slane %v1109_v52, %v1509_v11 }
 0x22e   :  { %v1124_v53 = vpop.permute.xlu0 %1123 }
 0x22f   :  { %v1212_v31 = vsel %vm358_vm3, %v1211_v8, %v1207_v28 }
 0x230   :  { %v1115_v55 = vpop.permute.xlu1 %1114  ;;  %v1217_v38 = vsel %vm365_vm4, %v1216_v36, %v1212_v31 }
 0x231   :  { %v1221_v32 = vrot.slane %v1115_v55, %v1522_v22 }
 0x232   :  { %v1724_v56 = vpop.permute.xlu0 %1129 }
 0x233   :  { %v1222_v41 = vsel %vm372_vm5, %v1221_v32, %v1217_v38 }
 0x234   :  { %v1121_v57 = vpop.permute.xlu1 %1120 }
 0x235   :  { %v1231_v42 = vrot.slane %v1121_v57, %v1536_v34 }
 0x236   :  { %v1151_v18 = vpop.permute.xlu0 %1150 }
 0x237   :  { %v1280_v20 = vrot.slane %v1151_v18, %v1498_v19 }
 0x238   :  { %v1127_v58 = vpop.permute.xlu1 %1126 }
 0x239   :  { %v1241_v55 = vrot.slane %v1127_v58, %v1550_v44 }
 0x23a   :  { %v1157_v35 = vpop.permute.xlu0 %1156 }
 0x23b   :  { %v1290_v33 = vrot.slane %v1157_v35, %v1509_v11  ;;  %v1226_v11 = vrot.slane %v1118_v49, %v1531_v30 }
 0x23c   :  { %v1148_v37 = vpop.permute.xlu1 %1147 }
 0x23d   :  { %v1276_v60 = vrot.slane %v1148_v37, %v1495_v3  ;;  %v1227_v46 = vsel %vm379_vm6, %v1226_v11, %v1222_v41 }
 0x23e   :  { %v1163_v61 = vpop.permute.xlu0 %1162  ;;  %v1232_v52 = vsel %vm386_vm7, %v1231_v42, %v1227_v46 }
 0x23f   :  { %v1281_v26 = vsel %vm344_vm1, %v1280_v20, %v1276_v60  ;;  %v1300_v43 = vrot.slane %v1163_v61, %v1522_v22  ;;  %v1236_v22 = vrot.slane %v1124_v53, %v1545_v40 }
 0x240   :  { %v1154_v63 = vpop.permute.xlu1 %1153 }
 0x241   :  { %v1285_v16 = vrot.slane %v1154_v63, %v1502_v6  ;;  %v1237_v49 = vsel %vm393_vm8, %v1236_v22, %v1232_v52 }
 0x242   :  { %v1169_v0 = vpop.permute.xlu0 %1168  ;;  %v1242_v61 = vsel %vm400_vm9, %v1241_v55, %v1237_v49 }
 0x243   :  { %v1286_v25 = vsel %vm351_vm2, %v1285_v16, %v1281_v26  ;;  %v1310_v57 = vrot.slane %v1169_v0, %v1536_v34 }
 0x244   :  { %v1160_v1 = vpop.permute.xlu1 %1159  ;;  %v1291_v6 = vsel %vm358_vm3, %v1290_v33, %v1286_v25 }
 0x245   :  { %v1295_v3 = vrot.slane %v1160_v1, %v1516_v15 }
 0x246   :  { %v1175_v4 = vpop.permute.xlu0 %1174 }
 0x247   :  { %v1296_v59 = vsel %vm365_vm4, %v1295_v3, %v1291_v6  ;;  %v1320_v63 = vrot.slane %v1175_v4, %v1550_v44 }
 0x248   :  { %v1166_v5 = vpop.permute.xlu1 %1165  ;;  %v1301_v15 = vsel %vm372_vm5, %v1300_v43, %v1296_v59 }
 0x249   :  { %v1305_v39 = vrot.slane %v1166_v5, %v1531_v30 }
 0x24a   :  { %v1726_v7 = vpop.permute.xlu0 %1132 }
 0x24b   :  { %v1306_v27 = vsel %vm379_vm6, %v1305_v39, %v1301_v15  ;;  %v1251_v58 = vrot.slane %v1726_v7, %v1564_v54 }
 0x24c   :  { %v1172_v12 = vpop.permute.xlu1 %1171  ;;  %v1311_v30 = vsel %vm386_vm7, %v1310_v57, %v1306_v27 }
 0x24d   :  { %v1315_v47 = vrot.slane %v1172_v12, %v1545_v40  ;;  %v1246_v40 = vrot.slane %v1724_v56, %v1559_v50 }
 0x24e   :  { %v1136_v17 = vpop.permute.xlu0 %1135 }
 0x24f   :  { %v1316_v35 = vsel %vm393_vm8, %v1315_v47, %v1311_v30  ;;  %v1256_v53 = vrot.slane %v1136_v17, %v1573_v62  ;;  %v1247_v4 = vsel %vm407_vm10, %v1246_v40, %v1242_v61 }
 0x250   :  { %v1178_v21 = vpop.permute.xlu1 %1177  ;;  %v1321_v9 = vsel %vm400_vm9, %v1320_v63, %v1316_v35  ;;  %v1252_v56 = vsel %vm414_vm11, %v1251_v58, %v1247_v4 }
 0x251   :  { %v1325_v37 = vrot.slane %v1178_v21, %v1559_v50  ;;  %v1257_v60 = vsel %vm421_vm12, %v1256_v53, %v1252_v56 }
 0x252   :  { %v1139_v19 = vpop.permute.xlu0 %1138 }
 0x253   :  { %v1261_v12 = vrot.slane %v1139_v19, %v1578_v2  ;;  %v1326_v7 = vsel %vm407_vm10, %v1325_v37, %v1321_v9 }
 0x254   :  { %v1181_v24 = vpop.permute.xlu1 %1180 }
 0x255   :  { %v1330_v34 = vrot.slane %v1181_v24, %v1564_v54 }
 0x256   :  { %v1142_v48 = vpop.permute.xlu0 %1141 }
 0x257   :  { %v1266_v54 = vrot.slane %v1142_v48, %v1586_v10 }
 0x258   :  { %v1184_v45 = vpop.permute.xlu1 %1183 }
 0x259   :  { %v1335_v0 = vrot.slane %v1184_v45, %v1573_v62  ;;  %v1331_v62 = vsel %vm414_vm11, %v1330_v34, %v1326_v7 }
 0x25a   :  { %v1145_v1 = vpop.permute.xlu0 %1144 }
 0x25b   :  { %v1271_v13 = vrot.slane %v1145_v1, %v1590_v14  ;;  %v1336_v16 = vsel %vm421_vm12, %v1335_v0, %v1331_v62 }
 0x25c   :  { %v1187_v18 = vpop.permute.xlu1 %1186 }
 0x25d   :  { %v1340_v44 = vrot.slane %v1187_v18, %v1578_v2  ;;  %v1262_v2 = vsel %vm428_vm13, %v1261_v12, %v1257_v60 }
 0x25e   :  { %v1267_v20 = vsel %vm435_vm14, %v1266_v54, %v1262_v2 }
 0x25f   :  { %v1341_v29 = vsel %vm428_vm13, %v1340_v44, %v1336_v16  ;;  %v1272_v23 = vsel %vm442_vm15, %v1271_v13, %v1267_v20 }
 0x260   :  { %v1190_v5 = vpop.permute.xlu1 %1189 }
 0x261   :  { %v1345_v50 = vrot.slane %v1190_v5, %v1586_v10 }
 0x263   :  { %v1346_v10 = vsel %vm435_vm14, %v1345_v50, %v1341_v29 }
 0x264   :  { %v1193_v17 = vpop.permute.xlu1 %1192 }
 0x265   :  { %v1350_v8 = vrot.slane %v1193_v17, %v1590_v14 }
 0x267   :  { %v1351_v21 = vsel %vm442_vm15, %v1350_v8, %v1346_v10 }
 0x268   :  { %v1352_v26 = vsel %vm523_vm0, %v1351_v21, %v1272_v23 }
 0x269   :  { %v1354_v28 = vadd.f32 %v1352_v26, %v1709_v51 }
 0x26b   :  { %1355 = vst [vmem:[#allocation3] sm:$0x3] %v1354_v28 }
 0x26c   :  { %1397 = shalt.err (!%p1394_p4)
}
 0x26d   :  { %s1398_s26 = scalar_lea.hbm %s1809_s3, 32 }
 0x26e   :  { %p1399_p5 = scmp.ne.s32.totalorder %s1809_s3, %s1398_s26  ;;  %p1402_p6 = scmp.lt.u32.totalorder %s1398_s26, %s1809_s3 }
 0x270   :  { %p1404_p7 = pnand %p1402_p6, %p1399_p5 }
 0x272   :  { %1407 = shalt.err (!%p1404_p7)
}
 0x273   :  { %1365 = dma.vmem_to_hbm [thread:$0]  %s1363_s22, 32, %s1809_s3, [#allocation4]  }
 0x274   :  { %1408 = dma.done.wait [#allocation4], 32  }
 0x275   :  { %1409 = vsyncadd [#allocation4], 4294967264 }
 0x276   :  { %1369 = vsyncpa [#allocation4], 1 }

</bundles_post_ra>
